<compile_context>
chip_gen: v7x
topology: tpu7x:2x2x1
jax: 0.10.0
libtpu: 0.0.40
codegen_flags: <defaults>
</compile_context>

<pallas_src>
import functools

import jax
import jax.numpy as jnp
from jax.experimental import pallas as pl
from jax.experimental.pallas import tpu as pltpu

HIDDEN1 = 128
HIDDEN2 = 64


def _round_up(n, m):
    return (n + m - 1) // m * m


def qnet_kernel(x_ref, w1_ref, b1_ref, w2_ref, b2_ref, w3_ref, b3_ref, o_ref):
    """One batch tile of the fused 3-layer MLP.

    x:  (tile_b, in_dim)  f32, streamed per grid step
    w1: (in_dim, 128)     f32  (layer 1 computed in f32; K=4 is free)
    w2: (128, 64)         bf16 (MXU operands), w3: (64, out_dim) bf16
    b*: f32               (1, width)
    o:  (tile_b, out_dim) f32
    Matmuls accumulate in f32 (preferred_element_type); bias/ReLU in f32.
    """
    h1 = jnp.dot(x_ref[...], w1_ref[...],
                 preferred_element_type=jnp.float32) + b1_ref[...]
    h1 = jnp.maximum(h1, 0.0)
    h2 = jnp.dot(h1.astype(jnp.bfloat16), w2_ref[...],
                 preferred_element_type=jnp.float32) + b2_ref[...]
    h2 = jnp.maximum(h2, 0.0)
    out = jnp.dot(h2.astype(jnp.bfloat16), w3_ref[...],
                  preferred_element_type=jnp.float32) + b3_ref[...]
    o_ref[...] = out.astype(o_ref.dtype)


def init_qnet_params(key, in_dim, out_dim):
    """PyTorch nn.Linear default init; weights stored transposed ([in, out])."""
    ks = jax.random.split(key, 6)
    dims = [(in_dim, HIDDEN1), (HIDDEN1, HIDDEN2), (HIDDEN2, out_dim)]
    params = {}
    for i, (fan_in, fan_out) in enumerate(dims, start=1):
        bound = 1.0 / float(fan_in) ** 0.5
        params[f"w{i}"] = jax.random.uniform(
            ks[2 * (i - 1)], (fan_in, fan_out), jnp.float32, -bound, bound)
        params[f"b{i}"] = jax.random.uniform(
            ks[2 * (i - 1) + 1], (1, fan_out), jnp.float32, -bound, bound)
    return params


def prepare_qnet_params(params):
    """No shape padding: just the dtype split the kernel expects."""
    return {
        "w1": params["w1"].astype(jnp.float32),   # layer 1 stays f32
        "b1": params["b1"].astype(jnp.float32),
        "w2": params["w2"].astype(jnp.bfloat16),  # bf16 MXU operands
        "b2": params["b2"].astype(jnp.float32),
        "w3": params["w3"].astype(jnp.bfloat16),
        "b3": params["b3"].astype(jnp.float32),
    }


@functools.partial(jax.jit, static_argnames=("out_dim", "grid_steps"))
def qnet_forward(x, prepped, *, out_dim, grid_steps=1):
    """x: [B, in_dim] float32. Returns [B, out_dim] float32 Q-values.

    grid_steps=1 is best on v5e/v6e (single TensorCore); grid_steps=2 lets
    v7x shard the two batch tiles across its two TensorCores.
    """
    B, in_dim = x.shape
    tile_b = _round_up((B + grid_steps - 1) // grid_steps, 8)
    b_pad = tile_b * grid_steps
    if b_pad != B:
        x = jnp.pad(x, ((0, b_pad - B), (0, 0)))

    h1 = prepped["w1"].shape[1]
    h2 = prepped["w2"].shape[1]
    const = lambda i: (0, 0)  # weights/biases: same block every step -> VMEM resident

    out = pl.pallas_call(
        qnet_kernel,
        out_shape=jax.ShapeDtypeStruct((b_pad, out_dim), jnp.float32),
        grid=(grid_steps,),
        in_specs=[
            pl.BlockSpec((tile_b, in_dim), lambda i: (i, 0)),   # x (streamed)
            pl.BlockSpec((in_dim, h1), const),                  # w1
            pl.BlockSpec((1, h1), const),                       # b1
            pl.BlockSpec((h1, h2), const),                      # w2
            pl.BlockSpec((1, h2), const),                       # b2
            pl.BlockSpec((h2, out_dim), const),                 # w3
            pl.BlockSpec((1, out_dim), const),                  # b3
        ],
        out_specs=pl.BlockSpec((tile_b, out_dim), lambda i: (i, 0)),
        compiler_params=pltpu.CompilerParams(
            dimension_semantics=("parallel",)),                 # v7x: shard batch tiles
    )(x, prepped["w1"], prepped["b1"], prepped["w2"], prepped["b2"],
      prepped["w3"], prepped["b3"])

    return out if b_pad == B else out[:B]


def qnet_reference_f32(x, params):
    """Plain-JAX f32 reference of the original PyTorch forward."""
    h1 = jnp.maximum(x @ params["w1"] + params["b1"], 0.0)
    h2 = jnp.maximum(h1 @ params["w2"] + params["b2"], 0.0)
    return h2 @ params["w3"] + params["b3"]


def qnet_reference_matched(x, prepped):
    """Plain-JAX reference matching the kernel's numerics (f32 layer 1,
    bf16 MXU operands for layers 2/3, f32 accumulation)."""
    h1 = jnp.maximum(
        jnp.dot(x, prepped["w1"], preferred_element_type=jnp.float32,
                precision=jax.lax.Precision.HIGHEST) + prepped["b1"], 0.0)
    h2 = jnp.maximum(
        jnp.dot(h1.astype(jnp.bfloat16), prepped["w2"],
                preferred_element_type=jnp.float32) + prepped["b2"], 0.0)
    return jnp.dot(h2.astype(jnp.bfloat16), prepped["w3"],
                   preferred_element_type=jnp.float32) + prepped["b3"]


if __name__ == "__main__":
    # CartPole-style DQN shapes: obs dim 4, 2 actions, small replay batch.
    B, IN_DIM, OUT_DIM = 64, 4, 2

    key = jax.random.PRNGKey(0)
    k_x, k_p = jax.random.split(key)
    x = jax.random.normal(k_x, (B, IN_DIM), dtype=jnp.float32)
    params = init_qnet_params(k_p, IN_DIM, OUT_DIM)
    prepped = prepare_qnet_params(params)

    # Default path: single grid step, whole batch in one tile.
    out = qnet_forward(x, prepped, out_dim=OUT_DIM)
    out = jax.block_until_ready(out)
    assert out.shape == (B, OUT_DIM), out.shape

    # Numerics-matched reference (f32 layer 1, bf16 layers 2/3).
    ref_match = qnet_reference_matched(x, prepped)
    assert jnp.allclose(out, ref_match, atol=2e-2, rtol=2e-2), \
        "mismatch vs numerics-matched reference"

    # Loose check against the full-f32 PyTorch-equivalent forward.
    ref_f32 = qnet_reference_f32(x, params)
    assert jnp.allclose(out, ref_f32, atol=5e-2, rtol=5e-2), \
        "mismatch vs f32 reference"

    # Exercise the batch-padding path (B not a multiple of 8).
    out_odd = jax.block_until_ready(
        qnet_forward(x[:37], prepped, out_dim=OUT_DIM))
    assert out_odd.shape == (37, OUT_DIM), out_odd.shape
    assert jnp.allclose(out_odd, ref_f32[:37], atol=5e-2, rtol=5e-2), \
        "mismatch on padded-batch path"

    # Exercise the 2-step grid (v7x: one tile per TensorCore); must match grid=1.
    out_2 = jax.block_until_ready(
        qnet_forward(x, prepped, out_dim=OUT_DIM, grid_steps=2))
    assert jnp.allclose(out, out_2, atol=1e-5, rtol=1e-5), \
        "grid_steps=2 disagrees with grid_steps=1"

    print("KERNEL_OK")
</pallas_src>

<mosaic_0001>
module attributes {stable_mosaic.version = 11 : i64} {
  func.func @qnet_kernel(%arg0: i32, %arg1: memref<64x4xf32, #tpu.memory_space<vmem>>, %arg2: memref<4x128xf32, #tpu.memory_space<vmem>>, %arg3: memref<1x128xf32, #tpu.memory_space<vmem>>, %arg4: memref<128x64xbf16, #tpu.memory_space<vmem>>, %arg5: memref<1x64xf32, #tpu.memory_space<vmem>>, %arg6: memref<64x2xbf16, #tpu.memory_space<vmem>>, %arg7: memref<1x2xf32, #tpu.memory_space<vmem>>, %arg8: memref<64x2xf32, #tpu.memory_space<vmem>>) attributes {dimension_semantics = [#tpu.dimension_semantics<parallel>], iteration_bounds = array<i64: 1>, scalar_prefetch = 0 : i64, scratch_operands = 0 : i64, tpu.core_type = #tpu.core_type<tc>, window_params = [{transform_indices = @transform_0, window_bounds = array<i64: 64, 4>}, {pipeline_mode = #tpu.pipeline_mode<synchronous>, transform_indices = @transform_1, window_bounds = array<i64: 4, 128>}, {pipeline_mode = #tpu.pipeline_mode<synchronous>, transform_indices = @transform_2, window_bounds = array<i64: 1, 128>}, {pipeline_mode = #tpu.pipeline_mode<synchronous>, transform_indices = @transform_3, window_bounds = array<i64: 128, 64>}, {pipeline_mode = #tpu.pipeline_mode<synchronous>, transform_indices = @transform_4, window_bounds = array<i64: 1, 64>}, {pipeline_mode = #tpu.pipeline_mode<synchronous>, transform_indices = @transform_5, window_bounds = array<i64: 64, 2>}, {pipeline_mode = #tpu.pipeline_mode<synchronous>, transform_indices = @transform_6, window_bounds = array<i64: 1, 2>}, {transform_indices = @transform_7, window_bounds = array<i64: 64, 2>}]} {
    %c0 = arith.constant 0 : index
    %c0_0 = arith.constant 0 : index
    %0 = vector.load %arg1[%c0, %c0_0] : memref<64x4xf32, #tpu.memory_space<vmem>>, vector<64x4xf32>
    %c0_1 = arith.constant 0 : index
    %c0_2 = arith.constant 0 : index
    %1 = vector.load %arg2[%c0_1, %c0_2] : memref<4x128xf32, #tpu.memory_space<vmem>>, vector<4x128xf32>
    %cst = arith.constant dense<0.000000e+00> : vector<64x128xf32>
    %2 = tpu.matmul %0, %1, %cst {dimension_numbers = #tpu.dot_dimension_numbers<[1], [0], [0], [1], [0, 0, 1, 1], [], []>} : vector<64x4xf32>, vector<4x128xf32>, vector<64x128xf32> -> vector<64x128xf32>
    %c0_3 = arith.constant 0 : index
    %c0_4 = arith.constant 0 : index
    %3 = vector.load %arg3[%c0_3, %c0_4] : memref<1x128xf32, #tpu.memory_space<vmem>>, vector<1x128xf32>
    %4 = vector.broadcast %3 : vector<1x128xf32> to vector<64x128xf32>
    %5 = arith.addf %2, %4 : vector<64x128xf32>
    %cst_5 = arith.constant 0.000000e+00 : f32
    %6 = vector.broadcast %cst_5 : f32 to vector<64x128xf32>
    %7 = arith.maximumf %5, %6 : vector<64x128xf32>
    %8 = arith.truncf %7 : vector<64x128xf32> to vector<64x128xbf16>
    %c0_6 = arith.constant 0 : index
    %c0_7 = arith.constant 0 : index
    %9 = vector.load %arg4[%c0_6, %c0_7] : memref<128x64xbf16, #tpu.memory_space<vmem>>, vector<128x64xbf16>
    %cst_8 = arith.constant dense<0.000000e+00> : vector<64x64xf32>
    %10 = tpu.matmul %8, %9, %cst_8 {dimension_numbers = #tpu.dot_dimension_numbers<[1], [0], [0], [1], [0, 0, 1, 1], [], []>} : vector<64x128xbf16>, vector<128x64xbf16>, vector<64x64xf32> -> vector<64x64xf32>
    %c0_9 = arith.constant 0 : index
    %c0_10 = arith.constant 0 : index
    %11 = vector.load %arg5[%c0_9, %c0_10] : memref<1x64xf32, #tpu.memory_space<vmem>>, vector<1x64xf32>
    %12 = vector.broadcast %11 : vector<1x64xf32> to vector<64x64xf32>
    %13 = arith.addf %10, %12 : vector<64x64xf32>
    %cst_11 = arith.constant 0.000000e+00 : f32
    %14 = vector.broadcast %cst_11 : f32 to vector<64x64xf32>
    %15 = arith.maximumf %13, %14 : vector<64x64xf32>
    %16 = arith.truncf %15 : vector<64x64xf32> to vector<64x64xbf16>
    %c0_12 = arith.constant 0 : index
    %c0_13 = arith.constant 0 : index
    %17 = vector.load %arg6[%c0_12, %c0_13] : memref<64x2xbf16, #tpu.memory_space<vmem>>, vector<64x2xbf16>
    %cst_14 = arith.constant dense<0.000000e+00> : vector<64x2xf32>
    %18 = tpu.matmul %16, %17, %cst_14 {dimension_numbers = #tpu.dot_dimension_numbers<[1], [0], [0], [1], [0, 0, 1, 1], [], []>} : vector<64x64xbf16>, vector<64x2xbf16>, vector<64x2xf32> -> vector<64x2xf32>
    %c0_15 = arith.constant 0 : index
    %c0_16 = arith.constant 0 : index
    %19 = vector.load %arg7[%c0_15, %c0_16] : memref<1x2xf32, #tpu.memory_space<vmem>>, vector<1x2xf32>
    %20 = vector.broadcast %19 : vector<1x2xf32> to vector<64x2xf32>
    %21 = arith.addf %18, %20 : vector<64x2xf32>
    %c0_17 = arith.constant 0 : index
    %c0_18 = arith.constant 0 : index
    %22 = vector.load %arg8[%c0_17, %c0_18] : memref<64x2xf32, #tpu.memory_space<vmem>>, vector<64x2xf32>
    tpu.vector_store %arg8[%c0_17, %c0_18], %21 {strides = array<i32>} : memref<64x2xf32, #tpu.memory_space<vmem>>, vector<64x2xf32>,
    return
  }
  func.func @transform_0(%arg0: i32) -> (i32, i32) {
    %c0_i32 = arith.constant 0 : i32
    %c0_i32_0 = arith.constant 0 : i32
    return %arg0, %c0_i32 : i32, i32
  }
  func.func @transform_1(%arg0: i32) -> (i32, i32) {
    %c0_i32 = arith.constant 0 : i32
    %c0_i32_0 = arith.constant 0 : i32
    %c0_i32_1 = arith.constant 0 : i32
    return %c0_i32, %c0_i32_0 : i32, i32
  }
  func.func @transform_2(%arg0: i32) -> (i32, i32) {
    %c0_i32 = arith.constant 0 : i32
    %c0_i32_0 = arith.constant 0 : i32
    %c0_i32_1 = arith.constant 0 : i32
    return %c0_i32, %c0_i32_0 : i32, i32
  }
  func.func @transform_3(%arg0: i32) -> (i32, i32) {
    %c0_i32 = arith.constant 0 : i32
    %c0_i32_0 = arith.constant 0 : i32
    %c0_i32_1 = arith.constant 0 : i32
    return %c0_i32, %c0_i32_0 : i32, i32
  }
  func.func @transform_4(%arg0: i32) -> (i32, i32) {
    %c0_i32 = arith.constant 0 : i32
    %c0_i32_0 = arith.constant 0 : i32
    %c0_i32_1 = arith.constant 0 : i32
    return %c0_i32, %c0_i32_0 : i32, i32
  }
  func.func @transform_5(%arg0: i32) -> (i32, i32) {
    %c0_i32 = arith.constant 0 : i32
    %c0_i32_0 = arith.constant 0 : i32
    %c0_i32_1 = arith.constant 0 : i32
    return %c0_i32, %c0_i32_0 : i32, i32
  }
  func.func @transform_6(%arg0: i32) -> (i32, i32) {
    %c0_i32 = arith.constant 0 : i32
    %c0_i32_0 = arith.constant 0 : i32
    %c0_i32_1 = arith.constant 0 : i32
    return %c0_i32, %c0_i32_0 : i32, i32
  }
  func.func @transform_7(%arg0: i32) -> (i32, i32) {
    %c0_i32 = arith.constant 0 : i32
    %c0_i32_0 = arith.constant 0 : i32
    return %arg0, %c0_i32 : i32, i32
  }
}

</mosaic_0001>

<bundles_post_ra>
// kernel: qnet_forward.1
= control target key start
LH: loop header
LB: loop body
LE: loop exit
PB: predicated region body
PF: predicated region fallthrough
CT: control target
= control target key end

     0   :  { %vm68_vm0 = vcmask 1043456   ;;  %vm43_vm1 = vcmask 31744   ;;  %vm376_vm2 = vcmask 523264   ;;  %vm454_vm3 = vcmask 15360   ;;  %s746_s1 = inlined_call_operand.vmem [shape: f32[4,128], index: 1, kind: input, shape index: {}]   ;;  %s747_s0 = inlined_call_operand.vmem [shape: f32[64,4], index: 0, kind: input, shape index: {}]   ;;  %s748_s3 = inlined_call_operand.vmem [shape: bf16[128,64], index: 3, kind: input, shape index: {}]   ;;  %s749_s5 = inlined_call_operand.vmem [shape: bf16[64,2], index: 5, kind: input, shape index: {}]   ;;  %s750_s2 = inlined_call_operand.vmem [shape: f32[1,128], index: 2, kind: input, shape index: {}]   ;;  %s751_s4 = inlined_call_operand.vmem [shape: f32[1,64], index: 4, kind: input, shape index: {}]   ;;  %s752_s6 = inlined_call_operand.vmem [shape: f32[1,2], index: 6, kind: input, shape index: {}]   ;;  %s753_s7 = inlined_call_operand.vmem [shape: f32[64,2], index: 7, kind: output, shape index: {}]  }
   0x1   :  { %v35_v0 = vld [vmem:[%s746_s1] sm:$0xf]  ;;  %v28_v2 = vld [vmem:[%s747_s0 + $0x8] sm:$0xff]  ;;  %v29_v3 = vld [vmem:[%s747_s0 + $0x10] sm:$0xff] }
   0x2   :  { %v27_v1 = vld [vmem:[%s747_s0] sm:$0xff]  ;;  %524 = vmatprep.subr.msk.mxu0 %vm68_vm0, %v35_v0  ;;  %v30_v4 = vld [vmem:[%s747_s0 + $0x18] sm:$0xff]  ;;  %v579_v6 = vld [vmem:[%s748_s3 + $0x8] sm:$0xff]  }
   0x3   :  { %526 = vmatprep.mubr.msk.f32.mxu0 %vm43_vm1, %v27_v1  ;;  %525 = vmatpush3.msk.msra.mxu0 %vm68_vm0, %v35_v0  ;;  %v578_v5 = vld [vmem:[%s748_s3] sm:$0xff]   ;;  %v32_v8 = vld [vmem:[%s747_s0 + $0x28] sm:$0xff]  ;;  %v33_v9 = vld [vmem:[%s747_s0 + $0x30] sm:$0xff] }
   0x4   :  { %527 = vmatmul.mubr.msk.f32.vlgmr.msra.gmra.mrb[0].mxu0 %vm43_vm1, %v28_v2  ;;  %v31_v7 = vld [vmem:[%s747_s0 + $0x20] sm:$0xff]  ;;  %538 = vmatprep.subr.bf16.mxu1 %v578_v5  ;;  %v580_v10 = vld [vmem:[%s748_s3 + $0x10] sm:$0xff]   ;;  %v581_v11 = vld [vmem:[%s748_s3 + $0x18] sm:$0xff]  }
   0x5   :  { %529 = vmatprep.mubr.msk.f32.mxu0 %vm43_vm1, %v29_v3  ;;  %539 = vmatpush3.bf16.msra.mxu1 %v578_v5  ;;  %v34_v12 = vld [vmem:[%s747_s0 + $0x38] sm:$0xff]  ;;  %v582_v13 = vld [vmem:[%s748_s3 + $0x20] sm:$0xff]   ;;  %v583_v14 = vld [vmem:[%s748_s3 + $0x28] sm:$0xff]  }
   0x6   :  { %540 = vmatprep.subr.bf16.mxu1 %v579_v6  ;;  %v584_v15 = vld [vmem:[%s748_s3 + $0x30] sm:$0xff]   ;;  %v585_v16 = vld [vmem:[%s748_s3 + $0x38] sm:$0xff]   ;;  %v586_v17 = vld [vmem:[%s749_s5] sm:$0xff]  }
   0x7   :  { %v587_v18 = vld [vmem:[%s749_s5 + $0x8] sm:$0xff]   ;;  %562 = vmatprep.subr.bf16.mxu0 %v586_v17  ;;  %v467_v19 = vld [vmem:[%s750_s2] ss:$0 sm:$0xff]  ;;  %v588_v48 = vld [vmem:[%s749_s5 + $0x10] sm:$0xff]  }
   0x8   :  { %530 = vmatmul.mubr.msk.f32.gmra.mrb[2].mxu0 %vm43_vm1, %v30_v4  ;;  %v589_v49 = vld [vmem:[%s749_s5 + $0x18] sm:$0xff]   ;;  %v477_v50 = vld [vmem:[%s751_s4] ss:$0 sm:$0xff] }
   0x9   :  { %532 = vmatprep.mubr.msk.f32.mxu0 %vm43_vm1, %v31_v7  ;;  %541 = vmatpush3.bf16.msra.mxu1 %v579_v6 }
   0xa   :  { %542 = vmatprep.subr.bf16.mxu1 %v580_v10  ;;  %563 = vmatpush3.bf16.msra.mxu0 %v586_v17 }
   0xb   :  { %564 = vmatprep.subr.bf16.mxu0 %v587_v18 }
   0xc   :  { %533 = vmatmul.mubr.msk.f32.gmra.mrb[4].mxu0 %vm43_vm1, %v32_v8 }
   0xd   :  { %535 = vmatprep.mubr.msk.f32.mxu0 %vm43_vm1, %v33_v9  ;;  %543 = vmatpush3.bf16.msra.mxu1 %v580_v10 }
   0xe   :  { %544 = vmatprep.subr.bf16.mxu1 %v581_v11  ;;  %565 = vmatpush3.bf16.msra.mxu0 %v587_v18 }
   0xf   :  { %566 = vmatprep.subr.bf16.mxu0 %v588_v48 }
  0x10   :  { %536 = vmatmul.mubr.msk.f32.gmra.mrb[6].mxu0 %vm43_vm1, %v34_v12 }
  0x11   :  { %545 = vmatpush3.bf16.msra.mxu1 %v581_v11 }
  0x12   :  { %546 = vmatprep.subr.bf16.mxu1 %v582_v13  ;;  %567 = vmatpush3.bf16.msra.mxu0 %v588_v48 }
  0x13   :  { %568 = vmatprep.subr.bf16.mxu0 %v589_v49 }
  0x15   :  { %547 = vmatpush3.bf16.msra.mxu1 %v582_v13 }
  0x16   :  { %548 = vmatprep.subr.bf16.mxu1 %v583_v14  ;;  %569 = vmatpush3.bf16.msra.mxu0 %v589_v49 }
  0x19   :  { %549 = vmatpush3.bf16.msra.mxu1 %v583_v14 }
  0x1a   :  { %550 = vmatprep.subr.bf16.mxu1 %v584_v15 }
  0x1d   :  { %551 = vmatpush3.bf16.msra.mxu1 %v584_v15  ;;  %v486_v15 = vld [vmem:[%s752_s6] ss:$0 sm:$0xff] }
  0x1e   :  { %552 = vmatprep.subr.bf16.mxu1 %v585_v16 }
  0x21   :  { %553 = vmatpush3.bf16.msra.mxu1 %v585_v16 }
  0xd7   :  { %v528_v20 = vpop.f32.mrb[0].mxu0 }
  0xd8   :  { %v144_v21 = vadd.f32 %v528_v20, %v467_v19  ;;  %v138_v22 = vpop.f32.mrb[1].mxu0 }
  0xd9   :  { %v139_v23 = vadd.f32 %v467_v19, %v138_v22 }
  0xda   :  { %v178_v24 = vmax.f32 %v144_v21, 0.0 }
  0xdb   :  { %v177_v25 = vmax.f32 %v139_v23, 0.0  ;;  %v531_v26 = vpop.f32.mrb[2].mxu0 }
  0xdc   :  { %v154_v27 = vadd.f32 %v531_v26, %v467_v19  ;;  %v148_v28 = vpop.f32.mrb[3].mxu0 }
  0xdd   :  { %v149_v29 = vadd.f32 %v467_v19, %v148_v28  ;;  %v185_v30 = vpack.c.bf16 %v178_v24, %v177_v25 }
  0xde   :  { %v180_v31 = vmax.f32 %v154_v27, 0.0 }
  0xdf   :  { %v179_v32 = vmax.f32 %v149_v29, 0.0  ;;  %v534_v33 = vpop.f32.mrb[4].mxu0  ;;  %554 = vmatprep.mubr.bf16.mxu1 %v185_v30 }
  0xe0   :  { %v164_v34 = vadd.f32 %v534_v33, %v467_v19  ;;  %v158_v35 = vpop.f32.mrb[5].mxu0 }
  0xe1   :  { %v186_v36 = vpack.c.bf16 %v180_v31, %v179_v32  ;;  %v159_v37 = vadd.f32 %v467_v19, %v158_v35 }
  0xe2   :  { %v182_v38 = vmax.f32 %v164_v34, 0.0 }
  0xe3   :  { %v181_v39 = vmax.f32 %v159_v37, 0.0  ;;  %v537_v40 = vpop.f32.mrb[6].mxu0  ;;  %555 = vmatmul.mubr.bf16.vlgmr.msra.gmra.mrb[0].mxu1 %v186_v36 }
  0xe4   :  { %v174_v41 = vadd.f32 %v537_v40, %v467_v19  ;;  %v168_v42 = vpop.f32.mrb[7].mxu0 }
  0xe5   :  { %v187_v43 = vpack.c.bf16 %v182_v38, %v181_v39  ;;  %v169_v44 = vadd.f32 %v467_v19, %v168_v42 }
  0xe6   :  { %v184_v45 = vmax.f32 %v174_v41, 0.0 }
  0xe7   :  { %v183_v46 = vmax.f32 %v169_v44, 0.0  ;;  %558 = vmatprep.mubr.bf16.mxu1 %v187_v43 }
  0xe9   :  { %v188_v47 = vpack.c.bf16 %v184_v45, %v183_v46 }
  0xeb   :  { %559 = vmatmul.mubr.bf16.gmra.mrb[4].mxu1 %v188_v47 }
 0x1b6   :  { %v556_v51 = vpop.f32.mrb[0].mxu1 }
 0x1b7   :  { %v303_v52 = vadd.f32 %v556_v51, %v477_v50  ;;  %v294_v53 = vpop.f32.mrb[1].mxu1 }
 0x1b8   :  { %v295_v54 = vadd.f32 %v477_v50, %v294_v53  ;;  %v557_v55 = vpop.f32.mrb[2].mxu1 }
 0x1b9   :  { %v306_v56 = vadd.f32 %v557_v55, %v477_v50  ;;  %v297_v57 = vpop.f32.mrb[3].mxu1  ;;  %v327_v59 = vmax.f32 %v303_v52, 0.0 }
 0x1ba   :  { %v298_v58 = vadd.f32 %v477_v50, %v297_v57  ;;  %v325_v61 = vmax.f32 %v295_v54, 0.0 }
 0x1bb   :  { %v328_v60 = vmax.f32 %v306_v56, 0.0 }
 0x1bc   :  { %v326_v62 = vmax.f32 %v298_v58, 0.0 }
 0x1bd   :  { %v334_v63 = vpack.c.bf16 %v328_v60, %v327_v59 }
 0x1be   :  { %v333_v0 = vpack.c.bf16 %v326_v62, %v325_v61  ;;  %v560_v1 = vpop.f32.mrb[4].mxu1 }
 0x1bf   :  { %v319_v2 = vadd.f32 %v560_v1, %v477_v50  ;;  %v310_v3 = vpop.f32.mrb[5].mxu1 }
 0x1c0   :  { %v311_v4 = vadd.f32 %v477_v50, %v310_v3  ;;  %v561_v5 = vpop.f32.mrb[6].mxu1  ;;  %570 = vmatprep.mubr.msk.bf16.mxu0 %vm376_vm2, %v333_v0 }
 0x1c1   :  { %v322_v6 = vadd.f32 %v561_v5, %v477_v50  ;;  %v313_v7 = vpop.f32.mrb[7].mxu1  ;;  %571 = vmatmul.mubr.msk.bf16.vlgmr.msra.gmra.mrb[8].mxu0 %vm376_vm2, %v334_v63  ;;  %v331_v9 = vmax.f32 %v319_v2, 0.0 }
 0x1c2   :  { %v314_v8 = vadd.f32 %v477_v50, %v313_v7  ;;  %v329_v11 = vmax.f32 %v311_v4, 0.0 }
 0x1c3   :  { %v332_v10 = vmax.f32 %v322_v6, 0.0 }
 0x1c4   :  { %v330_v12 = vmax.f32 %v314_v8, 0.0 }
 0x1c5   :  { %v336_v13 = vpack.c.bf16 %v332_v10, %v331_v9 }
 0x1c6   :  { %v335_v14 = vpack.c.bf16 %v330_v12, %v329_v11 }
 0x1c8   :  { %574 = vmatprep.mubr.msk.bf16.mxu0 %vm376_vm2, %v335_v14 }
 0x1c9   :  { %575 = vmatmul.mubr.msk.bf16.gmra.mrb[12].mxu0 %vm376_vm2, %v336_v13 }
 0x294   :  { %v572_v16 = vpop.f32.mrb[8].mxu0 }
 0x295   :  { %v432_v17 = vadd.f32 %v572_v16, %v486_v15  ;;  %v423_v18 = vpop.f32.mrb[9].mxu0 }
 0x296   :  { %v424_v19 = vadd.f32 %v486_v15, %v423_v18  ;;  %v573_v20 = vpop.f32.mrb[10].mxu0 }
 0x297   :  { %457 = vst.msk [vmem:[%s753_s7 + $0x10] sm:$0xff] %vm454_vm3, %v432_v17  ;;  %v435_v21 = vadd.f32 %v573_v20, %v486_v15  ;;  %v426_v22 = vpop.f32.mrb[11].mxu0 }
 0x298   :  { %455 = vst.msk [vmem:[%s753_s7] sm:$0xff] %vm454_vm3, %v424_v19  ;;  %v427_v23 = vadd.f32 %v486_v15, %v426_v22 }
 0x299   :  { %458 = vst.msk [vmem:[%s753_s7 + $0x18] sm:$0xff] %vm454_vm3, %v435_v21 }
 0x29a   :  { %456 = vst.msk [vmem:[%s753_s7 + $0x8] sm:$0xff] %vm454_vm3, %v427_v23 }
 0x29c   :  { %v576_v24 = vpop.f32.mrb[12].mxu0 }
 0x29d   :  { %v448_v25 = vadd.f32 %v576_v24, %v486_v15  ;;  %v439_v26 = vpop.f32.mrb[13].mxu0 }
 0x29e   :  { %v440_v27 = vadd.f32 %v486_v15, %v439_v26  ;;  %v577_v28 = vpop.f32.mrb[14].mxu0 }
 0x29f   :  { %461 = vst.msk [vmem:[%s753_s7 + $0x30] sm:$0xff] %vm454_vm3, %v448_v25  ;;  %v451_v29 = vadd.f32 %v577_v28, %v486_v15  ;;  %v442_v30 = vpop.f32.mrb[15].mxu0 }
 0x2a0   :  { %459 = vst.msk [vmem:[%s753_s7 + $0x20] sm:$0xff] %vm454_vm3, %v440_v27  ;;  %v443_v31 = vadd.f32 %v486_v15, %v442_v30 }
 0x2a1   :  { %462 = vst.msk [vmem:[%s753_s7 + $0x38] sm:$0xff] %vm454_vm3, %v451_v29 }
 0x2a2   :  { %460 = vst.msk [vmem:[%s753_s7 + $0x28] sm:$0xff] %vm454_vm3, %v443_v31 }

</bundles_post_ra>
